<compile_context>
chip_gen: v7x
topology: tpu7x:2x2x1
jax: 0.10.0
libtpu: 0.0.40
codegen_flags: <defaults>
</compile_context>

<pallas_src>
import jax
import jax.numpy as jnp
import numpy as np
from jax.experimental import pallas as pl
from jax.experimental.pallas import tpu as pltpu


def _embed_kernel(idx_ref, table_ref, out_ref):
    # idx_ref   : (Bt, F)    int32   -- indices for this batch tile
    # table_ref : (F, V, D)  float32 -- all embedding tables (VMEM resident)
    # out_ref   : (Bt, F*D)  float32 -- lane-dense output slab
    idx = idx_ref[...]                                            # [Bt, F]
    Bt = idx.shape[0]
    F, V, D = table_ref.shape
    FD = F * D

    iota_v = jax.lax.broadcasted_iota(jnp.int32, (Bt, V), 1)      # [Bt, V]
    col_j = jax.lax.broadcasted_iota(jnp.int32, (D, FD), 1)       # [D, FD]
    row_d = jax.lax.broadcasted_iota(jnp.int32, (D, FD), 0)       # [D, FD]

    acc = jnp.zeros((Bt, FD), jnp.float32)
    for f in range(F):                                            # static, unrolled
        onehot = (idx[:, f][:, None] == iota_v).astype(jnp.float32)      # [Bt, V]
        emb = jnp.dot(onehot, table_ref[f, :, :],
                      preferred_element_type=jnp.float32)                # [Bt, D] (MXU)
        # Selection matrix placing emb columns at offset f*D of the F*D slab.
        place = (col_j == row_d + f * D).astype(jnp.float32)             # [D, FD]
        acc = acc + jnp.dot(emb, place, preferred_element_type=jnp.float32)
    out_ref[...] = acc.astype(out_ref.dtype)


@jax.jit
def embedding_forward(batch_idx, tables):
    """batch_idx: [B, F] int, tables: [F, V_pad, D] f32  ->  [B, F, D] f32."""
    B, F = batch_idx.shape
    Ft, V, D = tables.shape
    assert Ft == F

    # Batch tile: multiple of 8 sublanes, capped at 256 rows per MXU pass.
    B_tile = min(256, ((B + 7) // 8) * 8)
    B_pad = ((B + B_tile - 1) // B_tile) * B_tile

    idx = batch_idx.astype(jnp.int32)
    if B_pad != B:
        # Pad with index 0 (valid row, result discarded below).
        idx = jnp.pad(idx, ((0, B_pad - B), (0, 0)))

    out_flat = pl.pallas_call(
        _embed_kernel,
        out_shape=jax.ShapeDtypeStruct((B_pad, F * D), jnp.float32),
        grid=(B_pad // B_tile,),
        in_specs=[
            pl.BlockSpec((B_tile, F), lambda b: (b, 0)),      # raw [B, F] indices
            pl.BlockSpec((F, V, D), lambda b: (0, 0, 0)),     # whole table stack
        ],
        out_specs=pl.BlockSpec((B_tile, F * D), lambda b: (b, 0)),
        compiler_params=pltpu.CompilerParams(
            dimension_semantics=("parallel",)),               # split batch across TCs
    )(idx, tables)

    # Contiguous reshape (free); drop padded rows.
    return out_flat[:B].reshape(B, F, D)


def _kaiming_uniform(key, shape):
    # nn.init.kaiming_uniform_ defaults: gain=sqrt(2), fan_in = shape[1]
    fan_in = shape[1]
    bound = float(np.sqrt(6.0 / fan_in))
    return jax.random.uniform(key, shape, jnp.float32, -bound, bound)


if __name__ == "__main__":
    # Small config consistent with the module's __init__.
    bins = 10                      # config['bins']
    dim_transformer = 32           # config['dim_transformer']
    num_continuous = 3             # EncodedInfo.num_continuous_features
    num_categories = [4, 6, 7]     # EncodedInfo.num_categories
    B = 8

    key = jax.random.PRNGKey(0)
    k_tab, k_idx = jax.random.split(key)

    # Build per-feature embedding tables (vocab = bins+1 / num_category+1),
    # zero-pad along vocab to a common V_pad, and stack.
    vocabs = [bins + 1] * num_continuous + [c + 1 for c in num_categories]
    F = len(vocabs)
    V_pad = int(np.ceil(max(vocabs) / 8) * 8)

    tab_keys = jax.random.split(k_tab, F)
    tables = []
    for kk, v in zip(tab_keys, vocabs):
        w = _kaiming_uniform(kk, (v, dim_transformer))
        w = jnp.pad(w, ((0, V_pad - v), (0, 0)))
        tables.append(w)
    tables = jnp.stack(tables, axis=0)                       # [F, V_pad, D]

    # Integer "batch" input: each column drawn within its feature's vocab.
    idx_keys = jax.random.split(k_idx, F)
    cols = [jax.random.randint(idx_keys[i], (B,), 0, vocabs[i], dtype=jnp.int32)
            for i in range(F)]
    batch = jnp.stack(cols, axis=1)                          # [B, F] int32

    out = embedding_forward(batch, tables)
    jax.block_until_ready(out)

    # Pure-JAX reference: direct table lookup.
    ref = tables[jnp.arange(F)[None, :], batch, :]           # [B, F, D]
    assert out.shape == (B, F, dim_transformer)
    np.testing.assert_allclose(np.asarray(out), np.asarray(ref),
                               rtol=1e-6, atol=1e-6)
    print("KERNEL_OK")
</pallas_src>

<mosaic_0001>
module attributes {stable_mosaic.version = 11 : i64} {
  func.func @_embed_kernel(%arg0: i32, %arg1: memref<8x6xi32, #tpu.memory_space<vmem>>, %arg2: memref<6x16x32xf32, #tpu.memory_space<vmem>>, %arg3: memref<8x192xf32, #tpu.memory_space<vmem>>) attributes {dimension_semantics = [#tpu.dimension_semantics<parallel>], iteration_bounds = array<i64: 1>, scalar_prefetch = 0 : i64, scratch_operands = 0 : i64, tpu.core_type = #tpu.core_type<tc>, window_params = [{transform_indices = @transform_0, window_bounds = array<i64: 8, 6>}, {pipeline_mode = #tpu.pipeline_mode<synchronous>, transform_indices = @transform_1, window_bounds = array<i64: 6, 16, 32>}, {transform_indices = @transform_2, window_bounds = array<i64: 8, 192>}]} {
    %c0 = arith.constant 0 : index
    %c0_0 = arith.constant 0 : index
    %0 = vector.load %arg1[%c0, %c0_0] : memref<8x6xi32, #tpu.memory_space<vmem>>, vector<8x6xi32>
    %1 = tpu.iota {dimensions = array<i32: 1>} : vector<8x16xi32>
    %2 = tpu.iota {dimensions = array<i32: 1>} : vector<32x192xi32>
    %3 = tpu.iota {dimensions = array<i32: 0>} : vector<32x192xi32>
    %cst = arith.constant 0.000000e+00 : f32
    %4 = vector.broadcast %cst : f32 to vector<8x192xf32>
    %5 = vector.extract_strided_slice %0 {offsets = [0, 0], sizes = [8, 1], strides = [1, 1]} : vector<8x6xi32> to vector<8x1xi32>
    %6 = vector.shape_cast %5 : vector<8x1xi32> to vector<8xi32>
    %7 = vector.shape_cast %6 : vector<8xi32> to vector<8x1xi32>
    %8 = vector.broadcast %7 : vector<8x1xi32> to vector<8x16xi32>
    %9 = arith.cmpi eq, %8, %1 : vector<8x16xi32>
    %10 = arith.extui %9 : vector<8x16xi1> to vector<8x16xi32>
    %11 = arith.sitofp %10 : vector<8x16xi32> to vector<8x16xf32>
    %c0_1 = arith.constant 0 : index
    %c0_2 = arith.constant 0 : index
    %c0_3 = arith.constant 0 : index
    %12 = vector.load %arg2[%c0_1, %c0_2, %c0_3] : memref<6x16x32xf32, #tpu.memory_space<vmem>>, vector<1x16x32xf32>
    %13 = vector.shape_cast %12 : vector<1x16x32xf32> to vector<16x32xf32>
    %cst_4 = arith.constant dense<0.000000e+00> : vector<8x32xf32>
    %14 = tpu.matmul %11, %13, %cst_4 {dimension_numbers = #tpu.dot_dimension_numbers<[1], [0], [0], [1], [0, 0, 1, 1], [], []>} : vector<8x16xf32>, vector<16x32xf32>, vector<8x32xf32> -> vector<8x32xf32>
    %c0_i32 = arith.constant 0 : i32
    %15 = vector.broadcast %c0_i32 : i32 to vector<32x192xi32>
    %16 = arith.addi %3, %15 : vector<32x192xi32>
    %17 = arith.cmpi eq, %2, %16 : vector<32x192xi32>
    %18 = arith.extui %17 : vector<32x192xi1> to vector<32x192xi32>
    %19 = arith.sitofp %18 : vector<32x192xi32> to vector<32x192xf32>
    %cst_5 = arith.constant dense<0.000000e+00> : vector<8x192xf32>
    %20 = tpu.matmul %14, %19, %cst_5 {dimension_numbers = #tpu.dot_dimension_numbers<[1], [0], [0], [1], [0, 0, 1, 1], [], []>} : vector<8x32xf32>, vector<32x192xf32>, vector<8x192xf32> -> vector<8x192xf32>
    %21 = arith.addf %4, %20 : vector<8x192xf32>
    %22 = vector.extract_strided_slice %0 {offsets = [0, 1], sizes = [8, 1], strides = [1, 1]} : vector<8x6xi32> to vector<8x1xi32>
    %23 = vector.shape_cast %22 : vector<8x1xi32> to vector<8xi32>
    %24 = vector.shape_cast %23 : vector<8xi32> to vector<8x1xi32>
    %25 = vector.broadcast %24 : vector<8x1xi32> to vector<8x16xi32>
    %26 = arith.cmpi eq, %25, %1 : vector<8x16xi32>
    %27 = arith.extui %26 : vector<8x16xi1> to vector<8x16xi32>
    %28 = arith.sitofp %27 : vector<8x16xi32> to vector<8x16xf32>
    %c1 = arith.constant 1 : index
    %c0_6 = arith.constant 0 : index
    %c0_7 = arith.constant 0 : index
    %29 = vector.load %arg2[%c1, %c0_6, %c0_7] : memref<6x16x32xf32, #tpu.memory_space<vmem>>, vector<1x16x32xf32>
    %30 = vector.shape_cast %29 : vector<1x16x32xf32> to vector<16x32xf32>
    %cst_8 = arith.constant dense<0.000000e+00> : vector<8x32xf32>
    %31 = tpu.matmul %28, %30, %cst_8 {dimension_numbers = #tpu.dot_dimension_numbers<[1], [0], [0], [1], [0, 0, 1, 1], [], []>} : vector<8x16xf32>, vector<16x32xf32>, vector<8x32xf32> -> vector<8x32xf32>
    %c32_i32 = arith.constant 32 : i32
    %32 = vector.broadcast %c32_i32 : i32 to vector<32x192xi32>
    %33 = arith.addi %3, %32 : vector<32x192xi32>
    %34 = arith.cmpi eq, %2, %33 : vector<32x192xi32>
    %35 = arith.extui %34 : vector<32x192xi1> to vector<32x192xi32>
    %36 = arith.sitofp %35 : vector<32x192xi32> to vector<32x192xf32>
    %cst_9 = arith.constant dense<0.000000e+00> : vector<8x192xf32>
    %37 = tpu.matmul %31, %36, %cst_9 {dimension_numbers = #tpu.dot_dimension_numbers<[1], [0], [0], [1], [0, 0, 1, 1], [], []>} : vector<8x32xf32>, vector<32x192xf32>, vector<8x192xf32> -> vector<8x192xf32>
    %38 = arith.addf %21, %37 : vector<8x192xf32>
    %39 = vector.extract_strided_slice %0 {offsets = [0, 2], sizes = [8, 1], strides = [1, 1]} : vector<8x6xi32> to vector<8x1xi32>
    %40 = vector.shape_cast %39 : vector<8x1xi32> to vector<8xi32>
    %41 = vector.shape_cast %40 : vector<8xi32> to vector<8x1xi32>
    %42 = vector.broadcast %41 : vector<8x1xi32> to vector<8x16xi32>
    %43 = arith.cmpi eq, %42, %1 : vector<8x16xi32>
    %44 = arith.extui %43 : vector<8x16xi1> to vector<8x16xi32>
    %45 = arith.sitofp %44 : vector<8x16xi32> to vector<8x16xf32>
    %c2 = arith.constant 2 : index
    %c0_10 = arith.constant 0 : index
    %c0_11 = arith.constant 0 : index
    %46 = vector.load %arg2[%c2, %c0_10, %c0_11] : memref<6x16x32xf32, #tpu.memory_space<vmem>>, vector<1x16x32xf32>
    %47 = vector.shape_cast %46 : vector<1x16x32xf32> to vector<16x32xf32>
    %cst_12 = arith.constant dense<0.000000e+00> : vector<8x32xf32>
    %48 = tpu.matmul %45, %47, %cst_12 {dimension_numbers = #tpu.dot_dimension_numbers<[1], [0], [0], [1], [0, 0, 1, 1], [], []>} : vector<8x16xf32>, vector<16x32xf32>, vector<8x32xf32> -> vector<8x32xf32>
    %c64_i32 = arith.constant 64 : i32
    %49 = vector.broadcast %c64_i32 : i32 to vector<32x192xi32>
    %50 = arith.addi %3, %49 : vector<32x192xi32>
    %51 = arith.cmpi eq, %2, %50 : vector<32x192xi32>
    %52 = arith.extui %51 : vector<32x192xi1> to vector<32x192xi32>
    %53 = arith.sitofp %52 : vector<32x192xi32> to vector<32x192xf32>
    %cst_13 = arith.constant dense<0.000000e+00> : vector<8x192xf32>
    %54 = tpu.matmul %48, %53, %cst_13 {dimension_numbers = #tpu.dot_dimension_numbers<[1], [0], [0], [1], [0, 0, 1, 1], [], []>} : vector<8x32xf32>, vector<32x192xf32>, vector<8x192xf32> -> vector<8x192xf32>
    %55 = arith.addf %38, %54 : vector<8x192xf32>
    %56 = vector.extract_strided_slice %0 {offsets = [0, 3], sizes = [8, 1], strides = [1, 1]} : vector<8x6xi32> to vector<8x1xi32>
    %57 = vector.shape_cast %56 : vector<8x1xi32> to vector<8xi32>
    %58 = vector.shape_cast %57 : vector<8xi32> to vector<8x1xi32>
    %59 = vector.broadcast %58 : vector<8x1xi32> to vector<8x16xi32>
    %60 = arith.cmpi eq, %59, %1 : vector<8x16xi32>
    %61 = arith.extui %60 : vector<8x16xi1> to vector<8x16xi32>
    %62 = arith.sitofp %61 : vector<8x16xi32> to vector<8x16xf32>
    %c3 = arith.constant 3 : index
    %c0_14 = arith.constant 0 : index
    %c0_15 = arith.constant 0 : index
    %63 = vector.load %arg2[%c3, %c0_14, %c0_15] : memref<6x16x32xf32, #tpu.memory_space<vmem>>, vector<1x16x32xf32>
    %64 = vector.shape_cast %63 : vector<1x16x32xf32> to vector<16x32xf32>
    %cst_16 = arith.constant dense<0.000000e+00> : vector<8x32xf32>
    %65 = tpu.matmul %62, %64, %cst_16 {dimension_numbers = #tpu.dot_dimension_numbers<[1], [0], [0], [1], [0, 0, 1, 1], [], []>} : vector<8x16xf32>, vector<16x32xf32>, vector<8x32xf32> -> vector<8x32xf32>
    %c96_i32 = arith.constant 96 : i32
    %66 = vector.broadcast %c96_i32 : i32 to vector<32x192xi32>
    %67 = arith.addi %3, %66 : vector<32x192xi32>
    %68 = arith.cmpi eq, %2, %67 : vector<32x192xi32>
    %69 = arith.extui %68 : vector<32x192xi1> to vector<32x192xi32>
    %70 = arith.sitofp %69 : vector<32x192xi32> to vector<32x192xf32>
    %cst_17 = arith.constant dense<0.000000e+00> : vector<8x192xf32>
    %71 = tpu.matmul %65, %70, %cst_17 {dimension_numbers = #tpu.dot_dimension_numbers<[1], [0], [0], [1], [0, 0, 1, 1], [], []>} : vector<8x32xf32>, vector<32x192xf32>, vector<8x192xf32> -> vector<8x192xf32>
    %72 = arith.addf %55, %71 : vector<8x192xf32>
    %73 = vector.extract_strided_slice %0 {offsets = [0, 4], sizes = [8, 1], strides = [1, 1]} : vector<8x6xi32> to vector<8x1xi32>
    %74 = vector.shape_cast %73 : vector<8x1xi32> to vector<8xi32>
    %75 = vector.shape_cast %74 : vector<8xi32> to vector<8x1xi32>
    %76 = vector.broadcast %75 : vector<8x1xi32> to vector<8x16xi32>
    %77 = arith.cmpi eq, %76, %1 : vector<8x16xi32>
    %78 = arith.extui %77 : vector<8x16xi1> to vector<8x16xi32>
    %79 = arith.sitofp %78 : vector<8x16xi32> to vector<8x16xf32>
    %c4 = arith.constant 4 : index
    %c0_18 = arith.constant 0 : index
    %c0_19 = arith.constant 0 : index
    %80 = vector.load %arg2[%c4, %c0_18, %c0_19] : memref<6x16x32xf32, #tpu.memory_space<vmem>>, vector<1x16x32xf32>
    %81 = vector.shape_cast %80 : vector<1x16x32xf32> to vector<16x32xf32>
    %cst_20 = arith.constant dense<0.000000e+00> : vector<8x32xf32>
    %82 = tpu.matmul %79, %81, %cst_20 {dimension_numbers = #tpu.dot_dimension_numbers<[1], [0], [0], [1], [0, 0, 1, 1], [], []>} : vector<8x16xf32>, vector<16x32xf32>, vector<8x32xf32> -> vector<8x32xf32>
    %c128_i32 = arith.constant 128 : i32
    %83 = vector.broadcast %c128_i32 : i32 to vector<32x192xi32>
    %84 = arith.addi %3, %83 : vector<32x192xi32>
    %85 = arith.cmpi eq, %2, %84 : vector<32x192xi32>
    %86 = arith.extui %85 : vector<32x192xi1> to vector<32x192xi32>
    %87 = arith.sitofp %86 : vector<32x192xi32> to vector<32x192xf32>
    %cst_21 = arith.constant dense<0.000000e+00> : vector<8x192xf32>
    %88 = tpu.matmul %82, %87, %cst_21 {dimension_numbers = #tpu.dot_dimension_numbers<[1], [0], [0], [1], [0, 0, 1, 1], [], []>} : vector<8x32xf32>, vector<32x192xf32>, vector<8x192xf32> -> vector<8x192xf32>
    %89 = arith.addf %72, %88 : vector<8x192xf32>
    %90 = vector.extract_strided_slice %0 {offsets = [0, 5], sizes = [8, 1], strides = [1, 1]} : vector<8x6xi32> to vector<8x1xi32>
    %91 = vector.shape_cast %90 : vector<8x1xi32> to vector<8xi32>
    %92 = vector.shape_cast %91 : vector<8xi32> to vector<8x1xi32>
    %93 = vector.broadcast %92 : vector<8x1xi32> to vector<8x16xi32>
    %94 = arith.cmpi eq, %93, %1 : vector<8x16xi32>
    %95 = arith.extui %94 : vector<8x16xi1> to vector<8x16xi32>
    %96 = arith.sitofp %95 : vector<8x16xi32> to vector<8x16xf32>
    %c5 = arith.constant 5 : index
    %c0_22 = arith.constant 0 : index
    %c0_23 = arith.constant 0 : index
    %97 = vector.load %arg2[%c5, %c0_22, %c0_23] : memref<6x16x32xf32, #tpu.memory_space<vmem>>, vector<1x16x32xf32>
    %98 = vector.shape_cast %97 : vector<1x16x32xf32> to vector<16x32xf32>
    %cst_24 = arith.constant dense<0.000000e+00> : vector<8x32xf32>
    %99 = tpu.matmul %96, %98, %cst_24 {dimension_numbers = #tpu.dot_dimension_numbers<[1], [0], [0], [1], [0, 0, 1, 1], [], []>} : vector<8x16xf32>, vector<16x32xf32>, vector<8x32xf32> -> vector<8x32xf32>
    %c160_i32 = arith.constant 160 : i32
    %100 = vector.broadcast %c160_i32 : i32 to vector<32x192xi32>
    %101 = arith.addi %3, %100 : vector<32x192xi32>
    %102 = arith.cmpi eq, %2, %101 : vector<32x192xi32>
    %103 = arith.extui %102 : vector<32x192xi1> to vector<32x192xi32>
    %104 = arith.sitofp %103 : vector<32x192xi32> to vector<32x192xf32>
    %cst_25 = arith.constant dense<0.000000e+00> : vector<8x192xf32>
    %105 = tpu.matmul %99, %104, %cst_25 {dimension_numbers = #tpu.dot_dimension_numbers<[1], [0], [0], [1], [0, 0, 1, 1], [], []>} : vector<8x32xf32>, vector<32x192xf32>, vector<8x192xf32> -> vector<8x192xf32>
    %106 = arith.addf %89, %105 : vector<8x192xf32>
    %c0_26 = arith.constant 0 : index
    %c0_27 = arith.constant 0 : index
    %107 = vector.load %arg3[%c0_26, %c0_27] : memref<8x192xf32, #tpu.memory_space<vmem>>, vector<8x192xf32>
    tpu.vector_store %arg3[%c0_26, %c0_27], %106 {strides = array<i32>} : memref<8x192xf32, #tpu.memory_space<vmem>>, vector<8x192xf32>,
    return
  }
  func.func @transform_0(%arg0: i32) -> (i32, i32) {
    %c0_i32 = arith.constant 0 : i32
    %c0_i32_0 = arith.constant 0 : i32
    return %arg0, %c0_i32 : i32, i32
  }
  func.func @transform_1(%arg0: i32) -> (i32, i32, i32) {
    %c0_i32 = arith.constant 0 : i32
    %c0_i32_0 = arith.constant 0 : i32
    %c0_i32_1 = arith.constant 0 : i32
    %c0_i32_2 = arith.constant 0 : i32
    return %c0_i32, %c0_i32_0, %c0_i32_1 : i32, i32, i32
  }
  func.func @transform_2(%arg0: i32) -> (i32, i32) {
    %c0_i32 = arith.constant 0 : i32
    %c0_i32_0 = arith.constant 0 : i32
    return %arg0, %c0_i32 : i32, i32
  }
}

</mosaic_0001>

<bundles_post_ra>
// kernel: embedding_forward.1
= control target key start
LH: loop header
LB: loop body
LE: loop exit
PB: predicated region body
PF: predicated region fallthrough
CT: control target
= control target key end

     0   :  { %7 = vsyncpa [#allocation3], 0  ;;  %s1688_s0 = inlined_call_operand.hbm [shape: s32[8,6], index: 0, kind: input, shape index: {}]   ;;  %s1689_s1 = inlined_call_operand.hbm [shape: f32[6,16,32], index: 1, kind: input, shape index: {}]   ;;  %s1690_s2 = inlined_call_operand.vmem [shape: f32[8,192], index: 2, kind: output, shape index: {}]  }
   0x1   :  { %8 = vsyncpa [#allocation5], 0  ;;  %s1482_s9 = smov [#allocation2]   ;;  %s1483_s11 = smov [#allocation4]  }
   0x2   :  { %s15_s10 = sshll.u32 %s1482_s9, 4  ;;  %s24_s12 = sshll.u32 %s1483_s11, 4  ;;  %s16_s10 = int_to_ptr.vmem [resolvable:$true] %s15_s10  ;;  %s1511_s12 = int_to_ptr.vmem [resolvable:$true] %s24_s12 }
   0x3   :  { %s1434_s15 = scalar_lea.hbm %s1688_s0, 128 }
   0x4   :  { %p1435_p0 = scmp.ne.s32.totalorder %s1688_s0, %s1434_s15  ;;  %p1438_p1 = scmp.lt.u32.totalorder %s1434_s15, %s1688_s0 }
   0x6   :  { %p1440_p2 = pnand %p1438_p1, %p1435_p0 }
   0x8   :  { %1443 = shalt.err (!%p1440_p2)
}
   0x9   :  { %s1444_s20 = scalar_lea.vmem %s16_s10, 128  ;;  %p1449_p4 = scmp.lt.s32.totalorder %s16_s10, %s16_s10 }
   0xa   :  { %p1445_p3 = scmp.ne.s32.totalorder %s16_s10, %s1444_s20  ;;  %p1450_p5 = scmp.lt.s32.totalorder %s1444_s20, %s1444_s20 }
   0xc   :  { %p1451_p6 = por %p1450_p5, %p1449_p4 }
   0xe   :  { %p1452_p7 = pnand %p1451_p6, %p1445_p3 }
  0x10   :  { %1455 = shalt.err (!%p1452_p7)
}
  0x11   :  { %18 = dma.hbm_to_vmem [thread:$0]  %s1688_s0, 128, %s16_s10, [#allocation3]  }
  0x12   :  { %s1456_s25 = scalar_lea.hbm %s1689_s1, 1536 }
  0x13   :  { %p1457_p8 = scmp.ne.s32.totalorder %s1689_s1, %s1456_s25  ;;  %p1460_p9 = scmp.lt.u32.totalorder %s1456_s25, %s1689_s1 }
  0x15   :  { %p1462_p10 = pnand %p1460_p9, %p1457_p8 }
  0x17   :  { %1465 = shalt.err (!%p1462_p10)
}
  0x18   :  { %s1466_s30 = scalar_lea.vmem %s1511_s12, 1536  ;;  %p1471_p12 = scmp.lt.s32.totalorder %s1511_s12, %s1511_s12 }
  0x19   :  { %p1467_p11 = scmp.ne.s32.totalorder %s1511_s12, %s1466_s30  ;;  %p1472_p13 = scmp.lt.s32.totalorder %s1466_s30, %s1466_s30 }
  0x1b   :  { %p1473_p0 = por %p1472_p13, %p1471_p12 }
  0x1d   :  { %p1474_p1 = pnand %p1473_p0, %p1467_p11 }
  0x1f   :  { %1477 = shalt.err (!%p1474_p1)
}
  0x20   :  { %s1484_s0 = smov 128   ;;  %s1485_s3 = smov 8  }
  0x21   :  { %30 = dma.hbm_to_vmem [thread:$0]  %s1689_s1, 1536, %s1511_s12, [#allocation5], %s1484_s0, %s1484_s0, %s1485_s3  }
  0x22   :  { %1478 = dma.done.wait [#allocation3], 128  }
  0x23   :  { %1479 = vsyncadd [#allocation3], 4294967168 }
  0x24   :  { %1480 = dma.done.wait [#allocation5], 1536  }
  0x25   :  { %1481 = vsyncadd [#allocation5], 4294965760  ;;  %v1486_v0 = vmov 3   ;;  %v1487_v1 = vmov 1   ;;  %v1488_v2 = vmov 0.0|0.0   ;;  %v37_v3 = vld [vmem:[#allocation2] sm:$0xff]  ;;  %v38_v15 = vlaneseq }
  0x26   :  { %1430 = vset.pattern.permute.xlu1 %v1486_v0  ;;  %1428 = vset.pattern.permute.xlu0 %v1487_v1  ;;  %v159_v4 = vld [vmem:[#allocation4 + $0x10] sm:$0xff]  ;;  %v160_v5 = vld [vmem:[#allocation4 + $0x18] sm:$0xff]  ;;  %vm1489_vm0 = vmmov 0   ;;  %v1490_v7 = vmov 0.0   ;;  %v1491_v8 = vmov 4   ;;  %v1492_v9 = vmov 2  }
  0x27   :  { %1357 = vmatprep.subr.bf16.mxu1 %v1488_v2  ;;  %1354 = vmatprep.subr.bf16.mxu0 %v1488_v2  ;;  %v1358_v6 = vpack.c.bf16 %v160_v5, %v159_v4  ;;  %v52_v10 = vld [vmem:[#allocation4] sm:$0xff]  ;;  %v53_v11 = vld [vmem:[#allocation4 + $0x8] sm:$0xff]  ;;  %v1493_v13 = vmov 0   ;;  %v1494_v14 = vmov 5   ;;  %v1550_v16 = vshrl.u32 %v38_v15, 7  ;;  %v604_v25 = vld [vmem:[#allocation4 + $0x30] sm:$0xff] }
  0x28   :  { %598 = vperm.xlu1 %1430, %v37_v3   ;;  %153 = vperm.xlu0 %1428, %v37_v3   ;;  %v1355_v12 = vpack.c.bf16 %v53_v11, %v52_v10  ;;  %v1552_v17 = vand.u32 127, %v38_v15  ;;  %v418_v18 = vld [vmem:[#allocation4 + $0x20] sm:$0xff]  ;;  %v419_v19 = vld [vmem:[#allocation4 + $0x28] sm:$0xff]  ;;  %vm54_vm1 = vcmask 130048   ;;  %v605_v26 = vld [vmem:[#allocation4 + $0x38] sm:$0xff] }
  0x29   :  { %1279 = vmatprep.mubr.msk.f32.mxu1 %vm1489_vm0, %v1490_v7  ;;  %1272 = vmatprep.mubr.msk.f32.mxu0 %vm1489_vm0, %v1490_v7  ;;  %v1373_v22 = vpack.c.bf16 %v419_v19, %v418_v18  ;;  %v1555_v23 = vadd.s32 8, %v1550_v16  ;;  %v234_v27 = vadd.s32 32, %v1550_v16  ;;  %v1565_v29 = vadd.s32 16, %v1550_v16  ;;  %v790_v34 = vld [vmem:[#allocation4 + $0x40] sm:$0xff]  ;;  %v791_v35 = vld [vmem:[#allocation4 + $0x48] sm:$0xff]  ;;  %v976_v60 = vld [vmem:[#allocation4 + $0x50] sm:$0xff] }
  0x2a   :  { %1359 = vmatpush3.bf16.msra.mxu1 %v1358_v6  ;;  %1356 = vmatpush3.bf16.msra.mxu0 %v1355_v12  ;;  %v1568_v30 = vadd.s32 24, %v1550_v16  ;;  %v1382_v33 = vpack.c.bf16 %v605_v26, %v604_v25  ;;  %v1391_v40 = vpack.c.bf16 %v791_v35, %v790_v34  ;;  %v1495_v44 = vmov 1.0|1.0   ;;  %v977_v61 = vld [vmem:[#allocation4 + $0x58] sm:$0xff] }
  0x2b   :  { %1372 = vmatprep.subr.bf16.mxu1 %v1488_v2  ;;  %1360 = vmatprep.subr.bf16.mxu0 %v1488_v2  ;;  %v235_v28 = vadd.s32 32, %v1555_v23  ;;  %vm238_vm5 = vcmp.eq.s32.totalorder %v1552_v17, %v234_v27  ;;  %v236_v37 = vadd.s32 32, %v1565_v29  ;;  %v1602_v45 = vadd.s32 128, %v1552_v17 }
  0x2c   :  { %1431 = vset.pattern.permute.xlu1 %v1491_v8  ;;  %1429 = vset.pattern.permute.xlu0 %v1492_v9  ;;  %v237_v38 = vadd.s32 32, %v1568_v30  ;;  %v865_v46 = vadd.s32 128, %v1550_v16  ;;  %v866_v47 = vadd.s32 128, %v1555_v23  ;;  %v867_v48 = vadd.s32 128, %v1565_v29 }
  0x2d   :  { %784 = vperm.xlu1 %1431, %v37_v3   ;;  %412 = vperm.xlu0 %1429, %v37_v3   ;;  %vm240_vm6 = vcmp.eq.s32.totalorder %v1552_v17, %v235_v28  ;;  %vm242_vm10 = vcmp.eq.s32.totalorder %v1552_v17, %v236_v37  ;;  %v868_v49 = vadd.s32 128, %v1568_v30  ;;  %v493_v52 = vadd.s32 64, %v1550_v16 }
  0x2e   :  { %vm1361_vm9 = vmpackc.low %vm240_vm6, %vm238_vm5  ;;  %vm244_vm11 = vcmp.eq.s32.totalorder %v1552_v17, %v237_v38  ;;  %vm870_vm13 = vcmp.eq.s32.totalorder %v1602_v45, %v865_v46  ;;  %vm872_vm14 = vcmp.eq.s32.totalorder %v1602_v45, %v866_v47  ;;  %vm128_vm5 = vcmp.eq.s32.totalorder %v1552_v17, %v1550_v16 }
  0x2f   :  { %vm1364_vm12 = vmpackc.low %vm244_vm11, %vm242_vm10  ;;  %vm130_vm6 = vcmp.eq.s32.totalorder %v1552_v17, %v1555_v23  ;;  %vm134_vm10 = vcmp.eq.s32.totalorder %v1552_v17, %v1568_v30  ;;  %v494_v53 = vadd.s32 64, %v1555_v23  ;;  %v495_v55 = vadd.s32 64, %v1565_v29 }
  0x30   :  { %vm1393_vm15 = vmpackc.low %vm872_vm14, %vm870_vm13  ;;  %v496_v56 = vadd.s32 64, %v1568_v30  ;;  %v1051_v58 = vadd.s32 160, %v1550_v16  ;;  %v1052_v59 = vadd.s32 160, %v1555_v23  ;;  %v680_v4 = vadd.s32 96, %v1555_v23 }
  0x31   :  { %1432 = vset.pattern.permute.xlu1 %v1493_v13  ;;  %1433 = vset.pattern.permute.xlu0 %v1494_v14  ;;  %vm499_vm13 = vcmp.eq.s32.totalorder %v1552_v17, %v494_v53  ;;  %v1400_v5 = vpack.c.bf16 %v977_v61, %v976_v60  ;;  %v681_v10 = vadd.s32 96, %v1565_v29  ;;  %v682_v11 = vadd.s32 96, %v1568_v30 }
  0x32   :  { %47 = vperm.xlu1 %1432, %v37_v3   ;;  %970 = vperm.xlu0 %1433, %v37_v3   ;;  %v679_v3 = vadd.s32 96, %v1550_v16  ;;  %v1053_v13 = vadd.s32 160, %v1565_v29  ;;  %v1054_v14 = vadd.s32 160, %v1568_v30 }
  0xa7   :  { %v154_v20 = vpop.permute.xlu0 %153  ;;  %v599_v21 = vpop.permute.xlu1 %598 }
  0xa8   :  { %vm155_vm2 = vcmp.eq.s32.totalorder %v154_v20, %v1552_v17  ;;  %vm600_vm3 = vcmp.eq.s32.totalorder %v599_v21, %v1552_v17 }
  0xa9   :  { %v1170_v24 = vsel %vm155_vm2, 1.0, %v1490_v7  ;;  %v1197_v39 = vsel %vm600_vm3, 1.0, %v1490_v7  ;;  %vm874_vm2 = vcmp.eq.s32.totalorder %v1602_v45, %v867_v48  ;;  %vm876_vm3 = vcmp.eq.s32.totalorder %v1602_v45, %v868_v49 }
  0xaa   :  { %1280 = vmatmul.mubr.msk.f32.vlgmr.msra.gmra.mrb[0].mxu1 %vm54_vm1, %v1170_v24 }
  0xab   :  { %1374 = vmatpush3.bf16.msra.mxu1 %v1373_v22  ;;  %1308 = vmatprep.mubr.msk.f32.mxu1 %vm1489_vm0, %v1490_v7 }
  0xac   :  { %v413_v31 = vpop.permute.xlu0 %412  ;;  %v785_v32 = vpop.permute.xlu1 %784  ;;  %1381 = vmatprep.subr.bf16.mxu1 %v1488_v2 }
  0xad   :  { %vm414_vm4 = vcmp.eq.s32.totalorder %v413_v31, %v1552_v17  ;;  %vm786_vm7 = vcmp.eq.s32.totalorder %v785_v32, %v1552_v17 }
  0xae   :  { %v1186_v36 = vsel %vm414_vm4, 1.0, %v1490_v7  ;;  %v1208_v43 = vsel %vm786_vm7, 1.0, %v1490_v7  ;;  %vm1396_vm4 = vmpackc.low %vm876_vm3, %vm874_vm2  ;;  %vm262_vm7 = vcmask 261120   ;;  %vm503_vm2 = vcmp.eq.s32.totalorder %v1552_v17, %v496_v56 }
  0xaf   :  { %1309 = vmatmul.mubr.msk.f32.vlgmr.msra.gmra.mrb[2].mxu1 %vm54_vm1, %v1186_v36  ;;  %vm1056_vm3 = vcmp.eq.s32.totalorder %v1602_v45, %v1051_v58 }
  0xb0   :  { %1383 = vmatpush3.bf16.msra.mxu1 %v1382_v33  ;;  %1326 = vmatprep.mubr.msk.f32.mxu1 %vm1489_vm0, %v1490_v7 }
  0xb1   :  { %v48_v41 = vpop.permute.xlu1 %47  ;;  %1390 = vmatprep.subr.bf16.mxu1 %v1488_v2  ;;  %v971_v63 = vpop.permute.xlu0 %970 }
  0xb2   :  { %vm49_vm8 = vcmp.eq.s32.totalorder %v48_v41, %v1552_v17 }
  0xb3   :  { %v1164_v42 = vsel %vm49_vm8, 1.0, %v1490_v7  ;;  %1327 = vmatmul.mubr.msk.f32.vlgmr.msra.gmra.mrb[4].mxu1 %vm54_vm1, %v1197_v39  ;;  %vm1367_vm8 = vmpackc.low %vm130_vm6, %vm128_vm5  ;;  %vm972_vm5 = vcmp.eq.s32.totalorder %v971_v63, %v1552_v17 }
  0xb4   :  { %1392 = vmatpush3.bf16.msra.mxu1 %v1391_v40  ;;  %1273 = vmatmul.mubr.msk.f32.vlgmr.msra.gmra.mrb[0].mxu0 %vm54_vm1, %v1164_v42  ;;  %v1219_v12 = vsel %vm972_vm5, 1.0, %v1490_v7 }
  0xb5   :  { %1344 = vmatprep.mubr.msk.f32.mxu1 %vm1489_vm0, %v1490_v7  ;;  %1362 = vmatpush3.bf16.msk.msra.mxu0 %vm1361_vm9, %v1495_v44  ;;  %vm132_vm9 = vcmp.eq.s32.totalorder %v1552_v17, %v1565_v29 }
  0xb6   :  { %1363 = vmatprep.subr.bf16.mxu0 %v1488_v2  ;;  %1290 = vmatprep.mubr.msk.f32.mxu0 %vm1489_vm0, %v1490_v7  ;;  %vm1370_vm11 = vmpackc.low %vm134_vm10, %vm132_vm9  ;;  %vm683_vm9 = vcmp.eq.s32.totalorder %v1552_v17, %v679_v3  ;;  %vm685_vm10 = vcmp.eq.s32.totalorder %v1552_v17, %v680_v4 }
  0xb7   :  { %1345 = vmatmul.mubr.msk.f32.vlgmr.msra.gmra.mrb[6].mxu1 %vm54_vm1, %v1208_v43  ;;  %1394 = vmatprep.subr.msk.bf16.mxu1 %vm1393_vm15, %v1495_v44  ;;  %vm501_vm15 = vcmp.eq.s32.totalorder %v1552_v17, %v495_v55 }
  0xb8   :  { %960 = vmatprep.mubr.f32.mxu1 %v1490_v7  ;;  %1395 = vmatpush1.bf16.msra.mxu1 %v1488_v2  ;;  %vm1379_vm6 = vmpackc.low %vm503_vm2, %vm501_vm15  ;;  %vm1062_vm15 = vcmp.eq.s32.totalorder %v1602_v45, %v1054_v14 }
  0xb9   :  { %1365 = vmatpush3.bf16.msk.msra.mxu0 %vm1364_vm12, %v1495_v44  ;;  %1397 = vmatprep.subr.msk.bf16.mxu1 %vm1396_vm4, %v1495_v44  ;;  %vm497_vm12 = vcmp.eq.s32.totalorder %v1552_v17, %v493_v52  ;;  %vm1058_vm4 = vcmp.eq.s32.totalorder %v1602_v45, %v1052_v59 }
  0xba   :  { %1366 = vmatprep.subr.bf16.mxu0 %v1488_v2  ;;  %vm1376_vm14 = vmpackc.low %vm499_vm13, %vm497_vm12  ;;  %vm687_vm12 = vcmp.eq.s32.totalorder %v1552_v17, %v681_v10  ;;  %vm689_vm13 = vcmp.eq.s32.totalorder %v1552_v17, %v682_v11 }
  0xbc   :  { %1398 = vmatpush1.bf16.msra.mxu1 %v1488_v2 }
  0xbd   :  { %1399 = vmatprep.subr.bf16.mxu1 %v1488_v2 }
 0x17d   :  { %v230_v50 = vpop.f32.mrb[0].mxu1 }
 0x17e   :  { %v1281_v51 = vpop.f32.mrb[1].mxu1  ;;  %1291 = vmatmul.mubr.msk.f32.vlgmr.msra.gmra.mrb[2].mxu0 %vm262_vm7, %v230_v50 }
 0x17f   :  { %1368 = vmatpush3.bf16.msk.msra.mxu0 %vm1367_vm8, %v1495_v44  ;;  %1301 = vmatprep.mubr.msk.f32.mxu0 %vm1489_vm0, %v1490_v7  ;;  %vm1402_vm8 = vmpackc.low %vm1058_vm4, %vm1056_vm3 }
 0x180   :  { %1369 = vmatprep.subr.bf16.mxu0 %v1488_v2 }
 0x182   :  { %v489_v54 = vpop.f32.mrb[2].mxu1 }
 0x183   :  { %v1310_v57 = vpop.f32.mrb[3].mxu1  ;;  %1371 = vmatpush3.bf16.msk.msra.mxu0 %vm1370_vm11, %v1495_v44  ;;  %vm1385_vm11 = vmpackc.low %vm685_vm10, %vm683_vm9 }
 0x184   :  { %1375 = vmatprep.subr.bf16.mxu0 %v1488_v2 }
 0x186   :  { %v675_v62 = vpop.f32.mrb[4].mxu1 }
 0x187   :  { %v124_v0 = vpop.f32.mrb[0].mxu0  ;;  %v1328_v1 = vpop.f32.mrb[5].mxu1 }
 0x188   :  { %1302 = vmatmul.mubr.msk.f32.vlgmr.msra.gmra.mrb[2].mxu0 %vm262_vm7, %v124_v0  ;;  %v1274_v6 = vpop.f32.mrb[1].mxu0 }
 0x189   :  { %1377 = vmatpush3.bf16.msk.msra.mxu0 %vm1376_vm14, %v1495_v44  ;;  %1319 = vmatprep.mubr.msk.f32.mxu0 %vm1489_vm0, %v1490_v7  ;;  %vm1388_vm14 = vmpackc.low %vm689_vm13, %vm687_vm12 }
 0x18a   :  { %v861_v8 = vpop.f32.mrb[6].mxu1  ;;  %1378 = vmatprep.subr.bf16.mxu0 %v1488_v2 }
 0x18b   :  { %v1346_v9 = vpop.f32.mrb[7].mxu1  ;;  %1218 = vmatmul.mubr.msk.f32.vlgmr.msra.gmra.mrb[8].mxu1 %vm262_vm7, %v861_v8 }
 0x18c   :  { %1401 = vmatpush3.bf16.msra.mxu1 %v1400_v5  ;;  %1351 = vmatprep.mubr.msk.f32.mxu1 %vm1489_vm0, %v1490_v7 }
 0x18d   :  { %1380 = vmatpush3.bf16.msk.msra.mxu0 %vm1379_vm6, %v1495_v44  ;;  %1403 = vmatprep.subr.msk.bf16.mxu1 %vm1402_vm8, %v1495_v44 }
 0x18e   :  { %1384 = vmatprep.subr.bf16.mxu0 %v1488_v2 }
 0x18f   :  { %1352 = vmatmul.mubr.msk.f32.vlgmr.msra.gmra.mrb[10].mxu1 %vm54_vm1, %v1219_v12  ;;  %vm1060_vm1 = vcmp.eq.s32.totalorder %v1602_v45, %v1053_v13 }
 0x190   :  { %1320 = vmatmul.mubr.msk.f32.vlgmr.msra.gmra.mrb[2].mxu0 %vm262_vm7, %v489_v54  ;;  %1404 = vmatpush1.bf16.msra.mxu1 %v1488_v2  ;;  %vm1405_vm2 = vmpackc.low %vm1062_vm15, %vm1060_vm1 }
 0x191   :  { %1386 = vmatpush3.bf16.msk.msra.mxu0 %vm1385_vm11, %v1495_v44  ;;  %1337 = vmatprep.mubr.msk.f32.mxu0 %vm1489_vm0, %v1490_v7  ;;  %vm1156_vm0 = vcmask 523264  }
 0x192   :  { %1387 = vmatprep.subr.bf16.mxu0 %v1488_v2  ;;  %1146 = vmatprep.mubr.f32.mxu1 %v1490_v7 }
 0x193   :  { %1406 = vmatprep.subr.msk.bf16.mxu1 %vm1405_vm2, %v1495_v44 }
 0x194   :  { %1407 = vmatpush1.bf16.msra.mxu1 %v1488_v2 }
 0x195   :  { %1389 = vmatpush3.bf16.msk.msra.mxu0 %vm1388_vm14, %v1495_v44 }
 0x198   :  { %1338 = vmatmul.mubr.msk.f32.vlgmr.msra.gmra.mrb[2].mxu0 %vm262_vm7, %v675_v62 }
 0x25e   :  { %v962_v15 = vpop.f32.mrb[8].mxu1 }
 0x25f   :  { %v964_v16 = vpop.f32.mrb[9].mxu1 }
 0x262   :  { %v1047_v7 = vpop.f32.mrb[10].mxu1 }
 0x263   :  { %v1353_v17 = vpop.f32.mrb[11].mxu1  ;;  %1229 = vmatmul.mubr.msk.f32.vlgmr.msra.gmra.mrb[12].mxu1 %vm262_vm7, %v1047_v7 }
 0x26b   :  { %v776_v18 = vpop.f32.mrb[2].mxu0 }
 0x26c   :  { %v967_v19 = vadd.f32 %v962_v15, %v776_v18  ;;  %v1339_v20 = vpop.f32.mrb[3].mxu0 }
 0x336   :  { %v1148_v21 = vpop.f32.mrb[12].mxu1 }
 0x337   :  { %v1153_v22 = vadd.f32 %v1148_v21, %v967_v19  ;;  %v1150_v23 = vpop.f32.mrb[13].mxu1 }
 0x338   :  { %v1154_v24 = vadd.f32 %v1150_v23, %v964_v16 }
 0x339   :  { %1155 = vst [vmem:[%s1690_s2] sm:$0xff] %v1153_v22 }
 0x33a   :  { %1157 = vst.msk [vmem:[%s1690_s2 + $0x8] sm:$0xff] %vm1156_vm0, %v1154_v24 }
 0x33b   :  { %1162 = vsyncpa [#allocation3], 1 }
 0x33c   :  { %1163 = vsyncpa [#allocation5], 1 }

</bundles_post_ra>
